<compile_context>
chip_gen: v6e
topology: v6e:2x2x1
jax: 0.10.0
libtpu: 0.0.40
codegen_flags: <defaults>
</compile_context>

<pallas_src>
import functools

import jax
import jax.numpy as jnp
from jax.experimental import pallas as pl
from jax.experimental.pallas import tpu as pltpu


def _num_terms(in_dim: int, poly_order: int, include_trig: bool) -> int:
    n = 1 + in_dim
    if poly_order >= 2:
        n += in_dim * (in_dim + 1) // 2
    if include_trig:
        n += 2 * in_dim
    return n


def _round_up(x: int, m: int) -> int:
    return ((x + m - 1) // m) * m


def _sindy_library_kernel(state_ref, out_ref, *, in_dim, poly_order,
                          include_trig, n_terms):
    # state_ref: (in_dim, TB)  -- features on sublanes, batch on lanes
    # out_ref:   (n_terms_pad, TB)
    s = state_ref[...]                                   # (in_dim, TB) f32

    # constant term
    out_ref[0:1, :] = jnp.ones_like(s[0:1, :])
    # linear terms
    out_ref[1:1 + in_dim, :] = s
    row = 1 + in_dim

    # quadratic cross terms z_i * z_j, j >= i  (vectorized per i)
    if poly_order >= 2:
        for i in range(in_dim):
            k = in_dim - i
            out_ref[row:row + k, :] = s[i:i + 1, :] * s[i:, :]
            row += k

    # trig terms
    if include_trig:
        out_ref[row:row + in_dim, :] = jnp.sin(s)
        row += in_dim
        out_ref[row:row + in_dim, :] = jnp.cos(s)
        row += in_dim

    # zero the sublane-padding rows (sliced off in the wrapper)
    n_pad = out_ref.shape[0] - n_terms
    if n_pad > 0:
        out_ref[n_terms:, :] = jnp.zeros((n_pad, s.shape[1]), s.dtype)


def sindy_library(state, *, poly_order=2, include_trig=True, block_batch=512):
    """state: (batch, in_dim) float32 -> (batch, n_terms) float32."""
    batch, in_dim = state.shape
    n_terms = _num_terms(in_dim, poly_order, include_trig)
    n_terms_pad = _round_up(n_terms, 8)

    # Lane tile over batch: multiple of 128, capped by block_batch.
    tb = min(block_batch, _round_up(batch, 128))
    tb = _round_up(tb, 128)
    batch_pad = _round_up(batch, tb)

    # Transpose + pad in the wrapper (layout plumbing, not kernel work).
    state_t = jnp.transpose(state)                       # (in_dim, batch)
    if batch_pad != batch:
        state_t = jnp.pad(state_t, ((0, 0), (0, batch_pad - batch)))

    kernel = functools.partial(
        _sindy_library_kernel,
        in_dim=in_dim,
        poly_order=poly_order,
        include_trig=include_trig,
        n_terms=n_terms,
    )

    grid = (batch_pad // tb,)
    out_t = pl.pallas_call(
        kernel,
        out_shape=jax.ShapeDtypeStruct((n_terms_pad, batch_pad), state.dtype),
        grid=grid,
        in_specs=[pl.BlockSpec((in_dim, tb), lambda i: (0, i))],
        out_specs=pl.BlockSpec((n_terms_pad, tb), lambda i: (0, i)),
        compiler_params=pltpu.CompilerParams(
            dimension_semantics=("parallel",)),
    )(state_t)

    # Slice off row / lane padding and transpose back to (batch, n_terms).
    return jnp.transpose(out_t[:n_terms, :batch])


def sindy_library_ref(state, *, poly_order=2, include_trig=True):
    """Pure-JAX reference mirroring the PyTorch forward."""
    in_dim = state.shape[1]
    lib = [jnp.ones_like(state[:, 0:1]), state]
    if poly_order >= 2:
        for i in range(in_dim):
            for j in range(i, in_dim):
                lib.append(state[:, i:i + 1] * state[:, j:j + 1])
    if include_trig:
        lib.append(jnp.sin(state))
        lib.append(jnp.cos(state))
    return jnp.concatenate(lib, axis=1)


if __name__ == "__main__":
    key = jax.random.PRNGKey(0)
    poly_order, include_trig = 2, True
    in_dim = 4                     # state = [z, x, y, yaw]

    # Small case (single grid step, padded lanes).
    k0, k1 = jax.random.split(key)
    state_small = jax.random.normal(k0, (8, in_dim), dtype=jnp.float32)
    out_small = jax.block_until_ready(
        sindy_library(state_small, poly_order=poly_order,
                      include_trig=include_trig))
    ref_small = sindy_library_ref(state_small, poly_order=poly_order,
                                  include_trig=include_trig)
    assert out_small.shape == (8, _num_terms(in_dim, poly_order, include_trig))
    assert jnp.allclose(out_small, ref_small, atol=1e-5, rtol=1e-5)

    # Slightly larger case exercising batch padding + multi-step grid.
    state_big = jax.random.normal(k1, (300, in_dim), dtype=jnp.float32)
    out_big = jax.block_until_ready(
        sindy_library(state_big, poly_order=poly_order,
                      include_trig=include_trig, block_batch=128))
    ref_big = sindy_library_ref(state_big, poly_order=poly_order,
                                include_trig=include_trig)
    assert out_big.shape == (300, _num_terms(in_dim, poly_order, include_trig))
    assert jnp.allclose(out_big, ref_big, atol=1e-5, rtol=1e-5)

    print("KERNEL_OK")
</pallas_src>

<mosaic_0001>
module attributes {stable_mosaic.version = 11 : i64} {
  func.func @_sindy_library_kernel(%arg0: i32, %arg1: memref<4x128xf32, #tpu.memory_space<vmem>>, %arg2: memref<24x128xf32, #tpu.memory_space<vmem>>) attributes {dimension_semantics = [#tpu.dimension_semantics<parallel>], iteration_bounds = array<i64: 1>, scalar_prefetch = 0 : i64, scratch_operands = 0 : i64, tpu.core_type = #tpu.core_type<tc>, window_params = [{transform_indices = @transform_0, window_bounds = array<i64: 4, 128>}, {transform_indices = @transform_1, window_bounds = array<i64: 24, 128>}]} {
    %c0 = arith.constant 0 : index
    %c0_0 = arith.constant 0 : index
    %0 = vector.load %arg1[%c0, %c0_0] : memref<4x128xf32, #tpu.memory_space<vmem>>, vector<4x128xf32>
    %cst = arith.constant 1.000000e+00 : f32
    %1 = vector.broadcast %cst : f32 to vector<1x128xf32>
    %c0_1 = arith.constant 0 : index
    %c0_2 = arith.constant 0 : index
    %2 = vector.load %arg2[%c0_1, %c0_2] : memref<24x128xf32, #tpu.memory_space<vmem>>, vector<1x128xf32>
    tpu.vector_store %arg2[%c0_1, %c0_2], %1 {strides = array<i32>} : memref<24x128xf32, #tpu.memory_space<vmem>>, vector<1x128xf32>,
    %c1 = arith.constant 1 : index
    %c0_3 = arith.constant 0 : index
    %3 = vector.load %arg2[%c1, %c0_3] : memref<24x128xf32, #tpu.memory_space<vmem>>, vector<4x128xf32>
    tpu.vector_store %arg2[%c1, %c0_3], %0 {strides = array<i32>} : memref<24x128xf32, #tpu.memory_space<vmem>>, vector<4x128xf32>,
    %4 = vector.extract_strided_slice %0 {offsets = [0, 0], sizes = [1, 128], strides = [1, 1]} : vector<4x128xf32> to vector<1x128xf32>
    %5 = vector.broadcast %4 : vector<1x128xf32> to vector<4x128xf32>
    %6 = arith.mulf %5, %0 : vector<4x128xf32>
    %c5 = arith.constant 5 : index
    %c0_4 = arith.constant 0 : index
    %7 = vector.load %arg2[%c5, %c0_4] : memref<24x128xf32, #tpu.memory_space<vmem>>, vector<4x128xf32>
    tpu.vector_store %arg2[%c5, %c0_4], %6 {strides = array<i32>} : memref<24x128xf32, #tpu.memory_space<vmem>>, vector<4x128xf32>,
    %8 = vector.extract_strided_slice %0 {offsets = [1, 0], sizes = [1, 128], strides = [1, 1]} : vector<4x128xf32> to vector<1x128xf32>
    %9 = vector.extract_strided_slice %0 {offsets = [1, 0], sizes = [3, 128], strides = [1, 1]} : vector<4x128xf32> to vector<3x128xf32>
    %10 = vector.broadcast %8 : vector<1x128xf32> to vector<3x128xf32>
    %11 = arith.mulf %10, %9 : vector<3x128xf32>
    %c9 = arith.constant 9 : index
    %c0_5 = arith.constant 0 : index
    %12 = vector.load %arg2[%c9, %c0_5] : memref<24x128xf32, #tpu.memory_space<vmem>>, vector<3x128xf32>
    tpu.vector_store %arg2[%c9, %c0_5], %11 {strides = array<i32>} : memref<24x128xf32, #tpu.memory_space<vmem>>, vector<3x128xf32>,
    %13 = vector.extract_strided_slice %0 {offsets = [2, 0], sizes = [1, 128], strides = [1, 1]} : vector<4x128xf32> to vector<1x128xf32>
    %14 = vector.extract_strided_slice %0 {offsets = [2, 0], sizes = [2, 128], strides = [1, 1]} : vector<4x128xf32> to vector<2x128xf32>
    %15 = vector.broadcast %13 : vector<1x128xf32> to vector<2x128xf32>
    %16 = arith.mulf %15, %14 : vector<2x128xf32>
    %c12 = arith.constant 12 : index
    %c0_6 = arith.constant 0 : index
    %17 = vector.load %arg2[%c12, %c0_6] : memref<24x128xf32, #tpu.memory_space<vmem>>, vector<2x128xf32>
    tpu.vector_store %arg2[%c12, %c0_6], %16 {strides = array<i32>} : memref<24x128xf32, #tpu.memory_space<vmem>>, vector<2x128xf32>,
    %18 = vector.extract_strided_slice %0 {offsets = [3, 0], sizes = [1, 128], strides = [1, 1]} : vector<4x128xf32> to vector<1x128xf32>
    %19 = vector.extract_strided_slice %0 {offsets = [3, 0], sizes = [1, 128], strides = [1, 1]} : vector<4x128xf32> to vector<1x128xf32>
    %20 = arith.mulf %18, %19 : vector<1x128xf32>
    %c14 = arith.constant 14 : index
    %c0_7 = arith.constant 0 : index
    %21 = vector.load %arg2[%c14, %c0_7] : memref<24x128xf32, #tpu.memory_space<vmem>>, vector<1x128xf32>
    tpu.vector_store %arg2[%c14, %c0_7], %20 {strides = array<i32>} : memref<24x128xf32, #tpu.memory_space<vmem>>, vector<1x128xf32>,
    %22 = math.sin %0 : vector<4x128xf32>
    %c15 = arith.constant 15 : index
    %c0_8 = arith.constant 0 : index
    %23 = vector.load %arg2[%c15, %c0_8] : memref<24x128xf32, #tpu.memory_space<vmem>>, vector<4x128xf32>
    tpu.vector_store %arg2[%c15, %c0_8], %22 {strides = array<i32>} : memref<24x128xf32, #tpu.memory_space<vmem>>, vector<4x128xf32>,
    %24 = math.cos %0 : vector<4x128xf32>
    %c19 = arith.constant 19 : index
    %c0_9 = arith.constant 0 : index
    %25 = vector.load %arg2[%c19, %c0_9] : memref<24x128xf32, #tpu.memory_space<vmem>>, vector<4x128xf32>
    tpu.vector_store %arg2[%c19, %c0_9], %24 {strides = array<i32>} : memref<24x128xf32, #tpu.memory_space<vmem>>, vector<4x128xf32>,
    %cst_10 = arith.constant 0.000000e+00 : f32
    %26 = vector.broadcast %cst_10 : f32 to vector<1x128xf32>
    %c23 = arith.constant 23 : index
    %c0_11 = arith.constant 0 : index
    %27 = vector.load %arg2[%c23, %c0_11] : memref<24x128xf32, #tpu.memory_space<vmem>>, vector<1x128xf32>
    tpu.vector_store %arg2[%c23, %c0_11], %26 {strides = array<i32>} : memref<24x128xf32, #tpu.memory_space<vmem>>, vector<1x128xf32>,
    return
  }
  func.func @transform_0(%arg0: i32) -> (i32, i32) {
    %c0_i32 = arith.constant 0 : i32
    %c0_i32_0 = arith.constant 0 : i32
    return %c0_i32, %arg0 : i32, i32
  }
  func.func @transform_1(%arg0: i32) -> (i32, i32) {
    %c0_i32 = arith.constant 0 : i32
    %c0_i32_0 = arith.constant 0 : i32
    return %c0_i32, %arg0 : i32, i32
  }
}

</mosaic_0001>

<bundles_post_ra>
// kernel: tpu_custom_call.1
= control target key start
LH: loop header
LB: loop body
LE: loop exit
PB: predicated region body
PF: predicated region fallthrough
CT: control target
= control target key end

     0   :  { %6 = vsyncpa [#allocation3], 0  ;;  %s401_s0 = inlined_call_operand.hbm [shape: f32[4,128], index: 0, kind: input, shape index: {}]   ;;  %s402_s1 = inlined_call_operand.hbm [shape: f32[24,128], index: 1, kind: output, shape index: {}]  }
   0x1   :  { %7 = vsyncpa [#allocation4], 0  ;;  %s343_s6 = smov [#allocation2]  }
   0x2   :  { %s14_s7 = sshll.u32 %s343_s6, 4  ;;  %s15_s7 = int_to_ptr.vmem [resolvable:$true] %s14_s7 }
   0x3   :  { %s307_s8 = scalar_lea.vmem %s15_s7, 64  ;;  %p312_p1 = scmp.lt.s32.totalorder %s15_s7, %s15_s7 }
   0x4   :  { %p308_p0 = scmp.ne.s32.totalorder %s15_s7, %s307_s8  ;;  %p313_p2 = scmp.lt.s32.totalorder %s307_s8, %s307_s8 }
   0x6   :  { %p314_p3 = por %p313_p2, %p312_p1 }
   0x8   :  { %p315_p4 = pnand %p314_p3, %p308_p0 }
   0xa   :  { %318 = shalt.err (!%p315_p4)
}
   0xb   :  { %17 = dma.hbm_to_vmem [thread:$0]  %s401_s0, 64, %s15_s7, [#allocation3]  }
   0xc   :  { %339 = dma.done.wait [#allocation3], 64  }
   0xd   :  { %340 = vsyncadd [#allocation3], 4294967232  ;;  %v24_v0 = vlaneseq  ;;  %v344_v1 = vmov 1.0   ;;  %v345_v2 = vmov 0.0   ;;  %v368_v7 = vld [vmem:[#allocation2] sm:$0xf] }
   0xe   :  { %22 = vst [vmem:[#allocation5] sm:$0x1] %v344_v1  ;;  %253 = vst [vmem:[#allocation5 + $0x17] sm:$0x1] %v345_v2  ;;  %v42_v11 = vmul.f32 %v368_v7, %v368_v7  ;;  %v47_v12 = vand.u32 2139095040, %v368_v7  ;;  %vm46_vm7 = vcmp.lt.s32.totalorder %v368_v7, 0  ;;  %vm136_vm15 = vweird.f32 %v368_v7 }
   0xf   :  { %v25_v3 = vshrl.u32 %v24_v0, 7  ;;  %23 = vst [vmem:[#allocation5 + $0x1] sm:$0xf] %v368_v7  ;;  %v44_v17 = vand.u32 2147483647, %v368_v7  ;;  %s352_s0 = smov [#allocation5]  }
  0x10   :  { %43 = vst [vmem:[#allocation5 + $0xb] sm:$0x8] %v42_v11  ;;  %v48_v16 = vshrl.u32 %v47_v12, 23  ;;  %v346_v26 = vmov 683565275   ;;  %s259_s11 = sshll.u32 %s352_s0, 4  ;;  %s260_s11 = int_to_ptr.vmem [resolvable:$true] %s259_s11 }
  0x11   :  { %v26_v4 = vsub.s32 0, %v25_v3  ;;  %v32_v5 = vsub.s32 1, %v25_v3  ;;  %v38_v6 = vsub.s32 2, %v25_v3  ;;  %v51_v20 = vand.u32 8388607, %v44_v17  ;;  %s319_s12 = scalar_lea.vmem %s260_s11, 384  ;;  %p324_p6 = scmp.lt.s32.totalorder %s260_s11, %s260_s11 }
  0x12   :  { %v271_v18 = vadd.s32 4294967169, %v48_v16  ;;  %v347_v28 = vmov 2475754826   ;;  %v348_v30 = vmov 2131351028   ;;  %p320_p5 = scmp.ne.s32.totalorder %s260_s11, %s319_s12  ;;  %p325_p7 = scmp.lt.s32.totalorder %s319_s12, %s319_s12 }
  0x13   :  { %v27_v8 = vrot.slane %v368_v7, %v26_v4  ;;  %v33_v9 = vrot.slane %v368_v7, %v32_v5  ;;  %v39_v10 = vrot.slane %v368_v7, %v38_v6  ;;  %v52_v23 = vor.u32 8388608, %v51_v20 }
  0x14   :  { %v54_v19 = vadd.s32 1, %v271_v18  ;;  %v349_v32 = vmov 2102212464   ;;  %v350_v34 = vmov 920167782   ;;  %p326_p8 = por %p325_p7, %p324_p6 }
  0x15   :  { %v28_v13 = vmul.f32 %v27_v8, %v368_v7  ;;  %v34_v14 = vmul.f32 %v33_v9, %v368_v7  ;;  %v40_v15 = vmul.f32 %v39_v10, %v368_v7  ;;  %v351_v41 = vmov 1326507024  }
  0x16   :  { %vm55_vm0 = vcmp.gt.s32.totalorder %v54_v19, 0  ;;  %v92_v43 = vshll.u32 %v52_v23, 8  ;;  %vm45_vm8 = vcmp.le.f32.partialorder %v44_v17, 0.7853982  ;;  %p327_p9 = pnand %p326_p8, %p320_p5 }
  0x17   :  { %29 = vst [vmem:[#allocation5 + $0x5] sm:$0xf] %v28_v13  ;;  %35 = vst [vmem:[#allocation5 + $0x8] sm:$0xe] %v34_v14  ;;  %v56_v21 = vsel %vm55_vm0, %v54_v19, 0 }
  0x18   :  { %41 = vst [vmem:[#allocation5 + $0xa] sm:$0xc] %v40_v15  ;;  %v58_v22 = vand.u32 31, %v56_v21  ;;  %v57_v24 = vshrl.u32 %v56_v21, 5 }
  0x1a   :  { %v59_v25 = vsub.s32 32, %v58_v22  ;;  %v61_v27 = vshll.u32 %v346_v26, %v58_v22  ;;  %v64_v29 = vshll.u32 %v347_v28, %v58_v22  ;;  %v67_v31 = vshll.u32 %v348_v30, %v58_v22 }
  0x1b   :  { %v70_v33 = vshll.u32 %v349_v32, %v58_v22  ;;  %v73_v35 = vshll.u32 %v350_v34, %v58_v22  ;;  %vm76_vm1 = vcmp.lt.s32.totalorder %v57_v24, 1  ;;  %vm79_vm2 = vcmp.lt.s32.totalorder %v57_v24, 4 }
  0x1c   :  { %v60_v36 = vshrl.u32 %v346_v26, %v59_v25  ;;  %v62_v37 = vshrl.u32 %v347_v28, %v59_v25  ;;  %v65_v38 = vshrl.u32 %v348_v30, %v59_v25  ;;  %v68_v39 = vshrl.u32 %v349_v32, %v59_v25 }
  0x1d   :  { %v71_v40 = vshrl.u32 %v350_v34, %v59_v25  ;;  %v74_v42 = vshrl.u32 %v351_v41, %v59_v25  ;;  %vm77_vm3 = vcmp.lt.s32.totalorder %v57_v24, 2  ;;  %vm78_vm4 = vcmp.lt.s32.totalorder %v57_v24, 3 }
  0x1e   :  { %v63_v44 = vor.u32 %v62_v37, %v61_v27  ;;  %v66_v45 = vor.u32 %v65_v38, %v64_v29  ;;  %v69_v46 = vor.u32 %v68_v39, %v67_v31 }
  0x1f   :  { %v72_v47 = vor.u32 %v71_v40, %v70_v33  ;;  %v75_v48 = vor.u32 %v74_v42, %v73_v35 }
  0x20   :  { %v80_v49 = vsel %vm76_vm1, %v60_v36, %v63_v44  ;;  %v81_v50 = vsel %vm79_vm2, %v69_v46, 2102212464  ;;  %v84_v51 = vsel %vm76_vm1, %v63_v44, %v66_v45  ;;  %v88_v52 = vsel %vm76_vm1, %v66_v45, %v69_v46 }
  0x21   :  { %v82_v53 = vsel %vm78_vm4, %v66_v45, %v81_v50  ;;  %v85_v54 = vsel %vm79_vm2, %v72_v47, 920167782  ;;  %v89_v55 = vsel %vm79_vm2, %v75_v48, 1326507024 }
  0x22   :  { %v86_v56 = vsel %vm78_vm4, %v69_v46, %v85_v54  ;;  %v90_v57 = vsel %vm78_vm4, %v72_v47, %v89_v55  ;;  %v83_v58 = vsel %vm77_vm3, %v80_v49, %v82_v53 }
  0x23   :  { %v87_v59 = vsel %vm77_vm3, %v84_v51, %v86_v56  ;;  %v91_v60 = vsel %vm77_vm3, %v88_v52, %v90_v57  ;;  %v99_v1 = vmul.u32 %v92_v43, %v83_v58 }
  0x24   :  { %v383_v61 = vmul.u32.u64.low %v92_v43, %v91_v60  ;;  %v384_v62 = vmul.u32.u64.high %v92_v43, %v91_v60, %v383_v61  ;;  %v386_v63 = vmul.u32.u64.low %v92_v43, %v87_v59  ;;  %v387_v0 = vmul.u32.u64.high %v92_v43, %v87_v59, %v386_v63 }
  0x26   :  { %vm101_vm5 = vc.u32 %v384_v62, %v386_v63  ;;  %v102_v2 = vadd.s32 1, %v387_v0  ;;  %v100_v14 = vadd.s32 %v386_v63, %v384_v62 }
  0x28   :  { %v103_v3 = vsel %vm101_vm5, %v102_v2, %v387_v0 }
  0x29   :  { %v104_v4 = vadd.s32 %v103_v3, %v99_v1 }
  0x2b   :  { %v105_v5 = vadd.s32 536870912, %v104_v4 }
  0x2d   :  { %v106_v6 = vshrl.u32 %v105_v5, 30 }
  0x2f   :  { %v107_v8 = vshll.u32 %v106_v6, 30  ;;  %v130_v28 = vsub.s32 4, %v106_v6 }
  0x31   :  { %v108_v9 = vsub.s32 %v104_v4, %v107_v8  ;;  %v131_v31 = vsel %vm46_vm7, %v130_v28, %v106_v6 }
  0x32   :  { %v133_v33 = vsel %vm45_vm8, 0, %v131_v31 }
  0x33   :  { %v110_v10 = vsub.s32 0, %v108_v9  ;;  %v137_v34 = vadd.s32 3, %v133_v33  ;;  %v242_v36 = vand.u32 3, %v133_v33 }
  0x35   :  { %v272_v11 = vmin.u32 %v110_v10, %v108_v9  ;;  %v138_v35 = vand.u32 3, %v137_v34  ;;  %vm247_vm10 = vcmp.eq.s32.totalorder %v242_v36, 2  ;;  %vm244_vm12 = vcmp.eq.s32.totalorder %v242_v36, 0 }
  0x36   :  { %vm243_vm14 = vcmp.lt.s32.totalorder %v242_v36, 2 }
  0x37   :  { %v112_v12 = vclz %v272_v11  ;;  %vm143_vm9 = vcmp.eq.s32.totalorder %v138_v35, 2  ;;  %vm140_vm11 = vcmp.eq.s32.totalorder %v138_v35, 0  ;;  %vm139_vm13 = vcmp.lt.s32.totalorder %v138_v35, 2 }
  0x39   :  { %v273_v13 = vadd.s32 4294967294, %v112_v12 }
  0x3b   :  { %vm274_vm6 = vcmp.lt.s32.totalorder %v273_v13, 0 }
  0x3c   :  { %v115_v15 = vsel %vm274_vm6, 0, %v273_v13 }
  0x3d   :  { %v116_v16 = vsub.s32 32, %v115_v15  ;;  %v117_v18 = vshll.u32 %v108_v9, %v115_v15  ;;  %v120_v19 = vsub.s32 4294967266, %v115_v15 }
  0x3f   :  { %v118_v20 = vshrl.u32 %v100_v14, %v116_v16  ;;  %v121_v21 = vadd.s32 127, %v120_v19 }
  0x41   :  { %v119_v22 = vor.u32 %v118_v20, %v117_v18  ;;  %v122_v23 = vshll.u32 %v121_v21, 23 }
  0x43   :  { %v123_v24 = vor.u32 4788187, %v122_v23  ;;  %v126_v25 = vcvt.s32.f32 %v119_v22 }
  0x45   :  { %v124_v26 = vand.u32 2147483647, %v123_v24 }
  0x47   :  { %v127_v27 = vmul.f32 %v126_v25, %v124_v26 }
  0x49   :  { %v128_v29 = vxor.u32 2147483648, %v127_v27 }
  0x4b   :  { %v129_v30 = vsel %vm46_vm7, %v128_v29, %v127_v27 }
  0x4c   :  { %v132_v32 = vsel %vm45_vm8, %v368_v7, %v129_v30 }
  0x4d   :  { %295 = vcosq.f32 %v132_v32 }
  0x4e   :  { %297 = vsinq.f32 %v132_v32 }
  0x5a   :  { %v296_v37 = vpop.eup %295 }
  0x5b   :  { %v298_v38 = vpop.eup %297  ;;  %v144_v39 = vxor.u32 2147483648, %v296_v37 }
  0x5c   :  { %v141_v17 = vxor.u32 2147483648, %v298_v38 }
  0x5d   :  { %v145_v40 = vsel %vm143_vm9, %v144_v39, %v298_v38  ;;  %v249_v41 = vsel %vm247_vm10, %v144_v39, %v298_v38 }
  0x5e   :  { %v142_v42 = vsel %vm140_vm11, %v296_v37, %v141_v17  ;;  %v246_v43 = vsel %vm244_vm12, %v296_v37, %v141_v17 }
  0x5f   :  { %v146_v44 = vsel %vm139_vm13, %v142_v42, %v145_v40  ;;  %v250_v45 = vsel %vm243_vm14, %v246_v43, %v249_v41 }
  0x60   :  { %v147_v46 = vsel %vm136_vm15, nan, %v146_v44  ;;  %v251_v47 = vsel %vm136_vm15, nan, %v250_v45 }
  0x61   :  { %148 = vst [vmem:[#allocation5 + $0xf] sm:$0xf] %v147_v46  ;;  %252 = vst [vmem:[#allocation5 + $0x13] sm:$0xf] %v251_v47 }
  0x62   :  { %330 = shalt.err (!%p327_p9)
}
  0x63   :  { %s353_s13 = smov 128   ;;  %s354_s14 = smov 8  }
  0x64   :  { %265 = dma.vmem_to_hbm [thread:$0]  %s260_s11, 384, %s402_s1, [#allocation4], %s353_s13, %s353_s13, %s354_s14  }
  0x65   :  { %341 = dma.done.wait [#allocation4], 384  }
  0x66   :  { %342 = vsyncadd [#allocation4], 4294966912 }
  0x67   :  { %269 = vsyncpa [#allocation3], 1 }
  0x68   :  { %270 = vsyncpa [#allocation4], 1 }

</bundles_post_ra>
